<compile_context>
chip_gen: v5e
topology: v5e:2x2
jax: 0.10.0
libtpu: 0.0.40
codegen_flags: <defaults>
</compile_context>

<pallas_src>
import functools

import jax
import jax.numpy as jnp
import numpy as np
from jax.experimental import pallas as pl
from jax.experimental.pallas import tpu as pltpu


def _readout_mask_kernel(z_ref, out_ref, *, n_read):
    # Copy the first `n_read` features (a static lane-prefix slice) of each row.
    out_ref[...] = z_ref[:, :n_read]


def readout_latent_mask_forward(z, n_latents_read, *, block_rows=512):
    """JAX/Pallas equivalent of ReadoutLatentMask.forward: z[..., :n_latents_read]."""
    n_latents = z.shape[-1]
    assert 0 < n_latents_read <= n_latents

    lead = z.shape[:-1]
    zf = z.reshape(-1, n_latents)
    n_rows = zf.shape[0]

    # Block sizing: either the whole array (always a legal block shape) or a
    # 512-row tile (multiple of 8 sublanes) pipelined over a 1-D grid.
    if n_rows <= block_rows:
        bn = n_rows
        grid = (1,)
    else:
        bn = block_rows
        grid = (pl.cdiv(n_rows, bn),)

    out = pl.pallas_call(
        functools.partial(_readout_mask_kernel, n_read=n_latents_read),
        out_shape=jax.ShapeDtypeStruct((n_rows, n_latents_read), z.dtype),
        grid=grid,
        in_specs=[pl.BlockSpec((bn, n_latents), lambda i: (i, 0))],
        out_specs=pl.BlockSpec((bn, n_latents_read), lambda i: (i, 0)),
        compiler_params=pltpu.CompilerParams(
            dimension_semantics=("parallel",)),
    )(zf)

    return out.reshape(*lead, n_latents_read)


def get_matrix_repr(n_latents, n_latents_read, dtype=jnp.float32):
    """Equivalent of ReadoutLatentMask.get_matrix_repr (plain JAX; no kernel needed)."""
    h = jnp.zeros((n_latents_read, n_latents), dtype)
    return h.at[jnp.arange(n_latents_read), jnp.arange(n_latents_read)].set(1.0)


if __name__ == "__main__":
    key = jax.random.PRNGKey(0)
    k1, k2 = jax.random.split(key)

    # Small shapes consistent with the module.
    B, T = 2, 8
    n_latents, n_latents_read = 32, 16
    z = jax.random.normal(k1, (B, T, n_latents), jnp.float32)

    out = readout_latent_mask_forward(z, n_latents_read)
    out = jax.block_until_ready(out)
    ref = z[..., :n_latents_read]
    assert out.shape == (B, T, n_latents_read)
    np.testing.assert_array_equal(np.asarray(out), np.asarray(ref))

    # Also exercise the tiled (multi-block, grid > 1) path.
    z_large = jax.random.normal(k2, (4, 512, n_latents), jnp.float32)  # N = 2048 rows
    out_large = jax.block_until_ready(
        readout_latent_mask_forward(z_large, n_latents_read))
    np.testing.assert_array_equal(
        np.asarray(out_large), np.asarray(z_large[..., :n_latents_read]))

    # Sanity-check the matrix representation helper as well.
    H = get_matrix_repr(n_latents, n_latents_read)
    np.testing.assert_array_equal(
        np.asarray(H @ z.reshape(-1, n_latents).T).T,
        np.asarray(ref.reshape(-1, n_latents_read)))

    print("KERNEL_OK")
</pallas_src>

<mosaic_0001>
module attributes {stable_mosaic.version = 11 : i64} {
  func.func @_readout_mask_kernel(%arg0: i32, %arg1: memref<16x32xf32, #tpu.memory_space<vmem>>, %arg2: memref<16x16xf32, #tpu.memory_space<vmem>>) attributes {dimension_semantics = [#tpu.dimension_semantics<parallel>], iteration_bounds = array<i64: 1>, scalar_prefetch = 0 : i64, scratch_operands = 0 : i64, tpu.core_type = #tpu.core_type<tc>, window_params = [{transform_indices = @transform_0, window_bounds = array<i64: 16, 32>}, {transform_indices = @transform_1, window_bounds = array<i64: 16, 16>}]} {
    %c0 = arith.constant 0 : index
    %c0_0 = arith.constant 0 : index
    %0 = vector.load %arg1[%c0, %c0_0] : memref<16x32xf32, #tpu.memory_space<vmem>>, vector<16x16xf32>
    %c0_1 = arith.constant 0 : index
    %c0_2 = arith.constant 0 : index
    %1 = vector.load %arg2[%c0_1, %c0_2] : memref<16x16xf32, #tpu.memory_space<vmem>>, vector<16x16xf32>
    tpu.vector_store %arg2[%c0_1, %c0_2], %0 {strides = array<i32>} : memref<16x16xf32, #tpu.memory_space<vmem>>, vector<16x16xf32>,
    return
  }
  func.func @transform_0(%arg0: i32) -> (i32, i32) {
    %c0_i32 = arith.constant 0 : i32
    %c0_i32_0 = arith.constant 0 : i32
    return %arg0, %c0_i32 : i32, i32
  }
  func.func @transform_1(%arg0: i32) -> (i32, i32) {
    %c0_i32 = arith.constant 0 : i32
    %c0_i32_0 = arith.constant 0 : i32
    return %arg0, %c0_i32 : i32, i32
  }
}

</mosaic_0001>

<bundles_post_ra>
// kernel: tpu_custom_call.1
= control target key start
LH: loop header
LB: loop body
LE: loop exit
PB: predicated region body
PF: predicated region fallthrough
CT: control target
= control target key end

     0   :  { %6 = vsyncpa [#allocation3], 0  ;;  %s125_s0 = inlined_call_operand.hbm [shape: f32[16,32], index: 0, kind: input, shape index: {}]   ;;  %s126_s1 = inlined_call_operand.hbm [shape: f32[16,16], index: 1, kind: output, shape index: {}]  }
   0x1   :  { %7 = vsyncpa [#allocation4], 0  ;;  %s12_s8 = sshll.u32 %s125_s0, 4  ;;  %s105_s9 = smov [#allocation2]   ;;  %s13_s8 = int_to_ptr.hbm [resolvable:$true] %s12_s8 }
   0x2   :  { %s14_s10 = sshll.u32 %s105_s9, 4  ;;  %s106_s11 = smov 128   ;;  %s15_s10 = int_to_ptr.vmem [resolvable:$true] %s14_s10 }
   0x3   :  { %s107_s12 = smov 8  }
   0x4   :  { %20 = dma.hbm_to_vmem [thread:$0]  %s13_s8, 256, %s15_s10, [#allocation3], %s106_s11, %s106_s11, %s107_s12  }
   0x5   :  { %101 = dma.done.wait [#allocation3], 256  }
   0x6   :  { %102 = vsyncadd [#allocation3], 4294967040  ;;  %s108_s13 = smov [#allocation5]   ;;  %s36_s17 = sshll.u32 %s126_s1, 4  ;;  %vm27_vm0 = vcmask 130048   ;;  %v25_v0 = vld [vmem:[#allocation2] sm:$0xff]  ;;  %s37_s17 = int_to_ptr.hbm [resolvable:$true] %s36_s17 }
   0x7   :  { %s34_s14 = sshll.u32 %s108_s13, 4  ;;  %v26_v1 = vld [vmem:[#allocation2 + $0x8] sm:$0xff]  ;;  %28 = vst.msk [vmem:[#allocation5] sm:$0xff] %vm27_vm0, %v25_v0  ;;  %s35_s14 = int_to_ptr.vmem [resolvable:$true] %s34_s14 }
   0x8   :  { %29 = vst.msk [vmem:[#allocation5 + $0x8] sm:$0xff] %vm27_vm0, %v26_v1 }
   0x9   :  { %42 = dma.vmem_to_hbm [thread:$0]  %s35_s14, 256, %s37_s17, [#allocation4], %s106_s11, %s106_s11, %s107_s12  }
   0xa   :  { %103 = dma.done.wait [#allocation4], 256  }
   0xb   :  { %104 = vsyncadd [#allocation4], 4294967040 }
   0xc   :  { %47 = vsyncpa [#allocation3], 1 }
   0xd   :  { %48 = vsyncpa [#allocation4], 1 }

</bundles_post_ra>
